<compile_context>
chip_gen: v6e
topology: v6e:2x2x1
jax: 0.10.0
libtpu: 0.0.40
codegen_flags: <defaults>
</compile_context>

<pallas_src>
from typing import List

import jax
import jax.numpy as jnp
from jax.experimental import pallas as pl
from jax.experimental.pallas import tpu as pltpu


def _trunk_kernel(x_ref, w1_ref, b1_ref, w2_ref, b2_ref, w3_ref, b3_ref,
                  out_ref):
    """One (batch_tile, head) grid step.

    x_ref  : (TN, S+F, E) bf16 — sensor rows (first S) ++ fullstate rows (last F)
    wK_ref : (1, E, E)    bf16 — layer-K weight for this head ("x @ W + b")
    bK_ref : (1, 1, E)    f32  — layer-K bias
    out_ref: (1, TN, S, F) f32
    """
    _, TN, S, F = out_ref.shape
    _, SF, E = x_ref.shape

    # Flatten (TN, S+F) into rows -> ONE MLP pass per head over all rows.
    # Free view when S+F is a multiple of the bf16 sublane tile (16); true at
    # the demo shapes (S+F = 16).
    x = x_ref[...].reshape(TN * SF, E)                       # bf16

    w1 = w1_ref[0]; w2 = w2_ref[0]; w3 = w3_ref[0]           # (E, E) bf16
    b1 = b1_ref[0]; b2 = b2_ref[0]; b3 = b3_ref[0]           # (1, E) f32

    # 3-layer MLP: bf16 MXU operands, f32 accumulation, f32 bias + ReLU.
    # NOTE: at production sizes E should be a multiple of 128 (v5e) /
    # 256 (v6e/v7x) to fill the MXU; for small E, layer 1 (shared x across
    # heads) could be widened by packing all heads' W1 as (E, n_heads*E).
    h = jnp.dot(x, w1, preferred_element_type=jnp.float32) + b1
    h = jnp.maximum(h, 0.0).astype(jnp.bfloat16)
    h = jnp.dot(h, w2, preferred_element_type=jnp.float32) + b2
    h = jnp.maximum(h, 0.0).astype(jnp.bfloat16)
    h = jnp.dot(h, w3, preferred_element_type=jnp.float32) + b3   # f32

    h3 = h.reshape(TN, SF, E)
    hs = h3[:, :S, :]           # (TN, S, E) f32; aligned slice when S % 8 == 0
    hf = h3[:, S:, :]           # (TN, F, E) f32

    # Final contraction kept in f32 (small FLOP share; avoids a second bf16
    # quantization -> closer to the f32 PyTorch semantics).
    # NOTE: contracts the lane axis of hf — fine while S,F are small; at
    # production F >= 128, produce hf in (TN, E, F) orientation to avoid a
    # per-batch XLU transpose.
    out = jnp.einsum("nse,nfe->nsf", hs, hf,
                     preferred_element_type=jnp.float32)
    out_ref[0] = out.astype(out_ref.dtype)


def _pick_batch_tile(N, S, F, E, budget_bytes=12 * 1024 * 1024):
    """Largest divisor of N whose per-step data blocks fit the VMEM budget."""
    per_batch = ((S + F) * E * 2            # bf16 embedding rows
                 + 2 * S * F * 4            # double-buffered f32 output block
                 + 6 * (S + F) * E * 4)     # f32 activation working set
    tn = int(max(1, min(N, budget_bytes // max(per_batch, 1))))
    while N % tn:
        tn -= 1
    return tn


def trunknet_forward(fullstate_time_embeddings: jnp.ndarray,
                     sensor_time_embeddings: jnp.ndarray,
                     params) -> List[jnp.ndarray]:
    """Pallas implementation of TrunkNet.forward.

    fullstate_time_embeddings: (N, F, E)
    sensor_time_embeddings   : (N, S, E)
    params: dict with stacked per-head weights:
        w1, w2, w3: (n_outputs, E, E)   (x @ W + b orientation)
        b1, b2, b3: (n_outputs, 1, E)
    Returns a list of n_outputs arrays, each (N, S, F).
    """
    assert fullstate_time_embeddings.ndim == sensor_time_embeddings.ndim == 3
    N, F, E = fullstate_time_embeddings.shape
    Nb, S, Es = sensor_time_embeddings.shape
    assert N == Nb and E == Es
    n_outputs = params["w1"].shape[0]
    assert params["w1"].shape == (n_outputs, E, E)

    # Hoisted out of the kernel: one (N, S+F, E) bf16 activation slab shared
    # by every head, and bf16 weights (the MXU consumes bf16 anyway).
    x = jnp.concatenate(
        [sensor_time_embeddings, fullstate_time_embeddings], axis=1
    ).astype(jnp.bfloat16)                                    # (N, S+F, E)
    w1 = params["w1"].astype(jnp.bfloat16)
    w2 = params["w2"].astype(jnp.bfloat16)
    w3 = params["w3"].astype(jnp.bfloat16)
    b1, b2, b3 = params["b1"], params["b2"], params["b3"]     # f32

    TN = _pick_batch_tile(N, S, F, E)
    n_batch_tiles = N // TN
    # Batch tiles OUTER: embeddings are constant across the inner head axis,
    # so the big slab is streamed from HBM exactly once; only the small
    # per-head weights are re-fetched per batch tile.
    grid = (n_batch_tiles, n_outputs)

    flops = int(2 * n_outputs * N * (S + F) * 3 * E * E
                + 2 * n_outputs * N * S * F * E)
    bytes_accessed = int(
        2 * N * (S + F) * E                                    # bf16 embeddings
        + n_batch_tiles * n_outputs * 3 * (E * E * 2 + E * 4)  # bf16 W + f32 b
        + 4 * n_outputs * N * S * F)                           # f32 output

    def make_call(embed_mode):
        emb_kwargs = {} if embed_mode is None else {"pipeline_mode": embed_mode}
        emb_spec = pl.BlockSpec((TN, S + F, E), lambda j, i: (j, 0, 0),
                                **emb_kwargs)
        w_spec = pl.BlockSpec((1, E, E), lambda j, i: (i, 0, 0))
        b_spec = pl.BlockSpec((1, 1, E), lambda j, i: (i, 0, 0))
        out_spec = pl.BlockSpec((1, TN, S, F), lambda j, i: (i, j, 0, 0))

        # VMEM budget from the actual block footprint (+2x headroom),
        # floored at the 32 MiB scoped default, capped at v7x's 64 MiB.
        n_emb_bufs = 1 if embed_mode is not None else 2
        est = (n_emb_bufs * TN * (S + F) * E * 2
               + 2 * 3 * (E * E * 2 + 8 * max(E, 128) * 4)
               + 2 * TN * S * F * 4
               + 6 * TN * (S + F) * E * 4)
        vmem_limit = int(min(max(2 * est, 32 * 1024 * 1024),
                             64 * 1024 * 1024))

        return pl.pallas_call(
            _trunk_kernel,
            out_shape=jax.ShapeDtypeStruct((n_outputs, N, S, F), jnp.float32),
            grid_spec=pltpu.PrefetchScalarGridSpec(
                num_scalar_prefetch=0,
                grid=grid,
                in_specs=[emb_spec,
                          w_spec, b_spec,
                          w_spec, b_spec,
                          w_spec, b_spec],
                out_specs=out_spec,
            ),
            compiler_params=pltpu.CompilerParams(
                dimension_semantics=("parallel", "parallel"),
                vmem_limit_bytes=vmem_limit),
            cost_estimate=pl.CostEstimate(flops=flops, transcendentals=0,
                                          bytes_accessed=bytes_accessed),
        )

    args = (x, w1, b1, w2, b2, w3, b3)
    if n_batch_tiles == 1:
        # Embedding block index is constant across the whole grid -> a single
        # VMEM buffer suffices (default double buffer is pure VMEM waste).
        # Fall back to default buffering if this build rejects buffer_count=1.
        try:
            out = make_call(pl.Buffered(1))(*args)
        except Exception:
            out = make_call(None)(*args)
    else:
        out = make_call(None)(*args)

    return [out[i] for i in range(n_outputs)]


def _reference_forward(fullstate, sensor, params, *, bf16_matmuls: bool):
    """Pure-JAX reference matching the PyTorch module semantics.

    With bf16_matmuls=True it mirrors the kernel's bf16-operand / f32-accum
    MLP policy (final contraction stays f32, like the kernel), giving a tight
    structural check; with False it is the exact f32 math of the PyTorch
    module (looser tolerance bounding the bf16 quantization error).
    """
    cast = (lambda a: a.astype(jnp.bfloat16)) if bf16_matmuls else (lambda a: a)
    n_outputs = params["w1"].shape[0]
    outs = []
    for i in range(n_outputs):
        w1 = cast(params["w1"][i]); b1 = params["b1"][i, 0]
        w2 = cast(params["w2"][i]); b2 = params["b2"][i, 0]
        w3 = cast(params["w3"][i]); b3 = params["b3"][i, 0]

        def mlp(t):
            h = jnp.dot(cast(t), w1, preferred_element_type=jnp.float32) + b1
            h = jnp.maximum(h, 0.0)
            h = jnp.dot(cast(h), w2, preferred_element_type=jnp.float32) + b2
            h = jnp.maximum(h, 0.0)
            h = jnp.dot(cast(h), w3, preferred_element_type=jnp.float32) + b3
            return h

        hs = mlp(sensor)       # (N, S, E) f32
        hf = mlp(fullstate)    # (N, F, E) f32
        outs.append(jnp.einsum("nse,nfe->nsf", hs, hf,
                               preferred_element_type=jnp.float32))
    return outs


def init_params(key, embedding_dim: int, n_outputs: int):
    """Deterministic synthetic parameters (shapes match nn.Linear stacks)."""
    keys = jax.random.split(key, 6)
    scale = 1.0 / jnp.sqrt(embedding_dim)
    shape_w = (n_outputs, embedding_dim, embedding_dim)
    shape_b = (n_outputs, 1, embedding_dim)
    return {
        "w1": jax.random.uniform(keys[0], shape_w, jnp.float32, -scale, scale),
        "b1": jax.random.uniform(keys[1], shape_b, jnp.float32, -scale, scale),
        "w2": jax.random.uniform(keys[2], shape_w, jnp.float32, -scale, scale),
        "b2": jax.random.uniform(keys[3], shape_b, jnp.float32, -scale, scale),
        "w3": jax.random.uniform(keys[4], shape_w, jnp.float32, -scale, scale),
        "b3": jax.random.uniform(keys[5], shape_b, jnp.float32, -scale, scale),
    }


if __name__ == "__main__":
    # Small shapes consistent with the module's forward.
    batch = 2
    embedding_dim = 32
    n_outputs = 3
    n_fullstate_timeframes = 8
    n_sensor_timeframes = 8

    key = jax.random.PRNGKey(0)
    k_full, k_sens, k_par = jax.random.split(key, 3)

    fullstate_time_embeddings = jax.random.normal(
        k_full, (batch, n_fullstate_timeframes, embedding_dim), jnp.float32)
    sensor_time_embeddings = jax.random.normal(
        k_sens, (batch, n_sensor_timeframes, embedding_dim), jnp.float32)
    params = init_params(k_par, embedding_dim, n_outputs)

    outputs = trunknet_forward(fullstate_time_embeddings,
                               sensor_time_embeddings, params)
    outputs = [jax.block_until_ready(o) for o in outputs]

    # Tight structural check against a reference using the same bf16-operand /
    # f32-accumulation policy as the kernel.
    refs_bf16 = _reference_forward(fullstate_time_embeddings,
                                   sensor_time_embeddings, params,
                                   bf16_matmuls=True)
    # Looser check against the exact f32 PyTorch-equivalent math (bounds the
    # bf16 quantization error introduced for MXU throughput).
    refs_f32 = _reference_forward(fullstate_time_embeddings,
                                  sensor_time_embeddings, params,
                                  bf16_matmuls=False)

    for o, r_bf, r_32 in zip(outputs, refs_bf16, refs_f32):
        assert o.shape == (batch, n_sensor_timeframes, n_fullstate_timeframes)
        assert jnp.allclose(o, r_bf, atol=2e-3, rtol=2e-3)
        assert jnp.allclose(o, r_32, atol=1e-1, rtol=1e-1)

    print("KERNEL_OK")
</pallas_src>

<mosaic_0001>
module attributes {stable_mosaic.version = 11 : i64} {
  func.func @_trunk_kernel(%arg0: i32, %arg1: i32, %arg2: memref<2x16x32xbf16, #tpu.memory_space<vmem>>, %arg3: memref<1x32x32xbf16, #tpu.memory_space<vmem>>, %arg4: memref<1x1x32xf32, #tpu.memory_space<vmem>>, %arg5: memref<1x32x32xbf16, #tpu.memory_space<vmem>>, %arg6: memref<1x1x32xf32, #tpu.memory_space<vmem>>, %arg7: memref<1x32x32xbf16, #tpu.memory_space<vmem>>, %arg8: memref<1x1x32xf32, #tpu.memory_space<vmem>>, %arg9: memref<1x2x8x8xf32, #tpu.memory_space<vmem>>) attributes {dimension_semantics = [#tpu.dimension_semantics<parallel>, #tpu.dimension_semantics<parallel>], iteration_bounds = array<i64: 1, 3>, scalar_prefetch = 0 : i64, scratch_operands = 0 : i64, tpu.core_type = #tpu.core_type<tc>, window_params = [{pipeline_mode = #tpu.pipeline_mode<synchronous>, transform_indices = @transform_0, window_bounds = array<i64: 2, 16, 32>}, {transform_indices = @transform_1, window_bounds = array<i64: 1, 32, 32>}, {transform_indices = @transform_2, window_bounds = array<i64: 1, 1, 32>}, {transform_indices = @transform_3, window_bounds = array<i64: 1, 32, 32>}, {transform_indices = @transform_4, window_bounds = array<i64: 1, 1, 32>}, {transform_indices = @transform_5, window_bounds = array<i64: 1, 32, 32>}, {transform_indices = @transform_6, window_bounds = array<i64: 1, 1, 32>}, {transform_indices = @transform_7, window_bounds = array<i64: 1, 2, 8, 8>}]} {
    %c0 = arith.constant 0 : index
    %c0_0 = arith.constant 0 : index
    %c0_1 = arith.constant 0 : index
    %0 = vector.load %arg2[%c0, %c0_0, %c0_1] : memref<2x16x32xbf16, #tpu.memory_space<vmem>>, vector<2x16x32xbf16>
    %1 = vector.shape_cast %0 : vector<2x16x32xbf16> to vector<32x32xbf16>
    %c0_2 = arith.constant 0 : index
    %c0_3 = arith.constant 0 : index
    %c0_4 = arith.constant 0 : index
    %2 = vector.load %arg3[%c0_2, %c0_3, %c0_4] : memref<1x32x32xbf16, #tpu.memory_space<vmem>>, vector<1x32x32xbf16>
    %3 = vector.shape_cast %2 : vector<1x32x32xbf16> to vector<32x32xbf16>
    %c0_5 = arith.constant 0 : index
    %c0_6 = arith.constant 0 : index
    %c0_7 = arith.constant 0 : index
    %4 = vector.load %arg5[%c0_5, %c0_6, %c0_7] : memref<1x32x32xbf16, #tpu.memory_space<vmem>>, vector<1x32x32xbf16>
    %5 = vector.shape_cast %4 : vector<1x32x32xbf16> to vector<32x32xbf16>
    %c0_8 = arith.constant 0 : index
    %c0_9 = arith.constant 0 : index
    %c0_10 = arith.constant 0 : index
    %6 = vector.load %arg7[%c0_8, %c0_9, %c0_10] : memref<1x32x32xbf16, #tpu.memory_space<vmem>>, vector<1x32x32xbf16>
    %7 = vector.shape_cast %6 : vector<1x32x32xbf16> to vector<32x32xbf16>
    %c0_11 = arith.constant 0 : index
    %c0_12 = arith.constant 0 : index
    %c0_13 = arith.constant 0 : index
    %8 = vector.load %arg4[%c0_11, %c0_12, %c0_13] : memref<1x1x32xf32, #tpu.memory_space<vmem>>, vector<1x1x32xf32>
    %9 = vector.shape_cast %8 : vector<1x1x32xf32> to vector<1x32xf32>
    %c0_14 = arith.constant 0 : index
    %c0_15 = arith.constant 0 : index
    %c0_16 = arith.constant 0 : index
    %10 = vector.load %arg6[%c0_14, %c0_15, %c0_16] : memref<1x1x32xf32, #tpu.memory_space<vmem>>, vector<1x1x32xf32>
    %11 = vector.shape_cast %10 : vector<1x1x32xf32> to vector<1x32xf32>
    %c0_17 = arith.constant 0 : index
    %c0_18 = arith.constant 0 : index
    %c0_19 = arith.constant 0 : index
    %12 = vector.load %arg8[%c0_17, %c0_18, %c0_19] : memref<1x1x32xf32, #tpu.memory_space<vmem>>, vector<1x1x32xf32>
    %13 = vector.shape_cast %12 : vector<1x1x32xf32> to vector<1x32xf32>
    %cst = arith.constant dense<0.000000e+00> : vector<32x32xf32>
    %14 = tpu.matmul %1, %3, %cst {dimension_numbers = #tpu.dot_dimension_numbers<[1], [0], [0], [1], [0, 0, 1, 1], [], []>} : vector<32x32xbf16>, vector<32x32xbf16>, vector<32x32xf32> -> vector<32x32xf32>
    %15 = vector.broadcast %9 : vector<1x32xf32> to vector<32x32xf32>
    %16 = arith.addf %14, %15 : vector<32x32xf32>
    %cst_20 = arith.constant 0.000000e+00 : f32
    %17 = vector.broadcast %cst_20 : f32 to vector<32x32xf32>
    %18 = arith.maximumf %16, %17 : vector<32x32xf32>
    %19 = arith.truncf %18 : vector<32x32xf32> to vector<32x32xbf16>
    %cst_21 = arith.constant dense<0.000000e+00> : vector<32x32xf32>
    %20 = tpu.matmul %19, %5, %cst_21 {dimension_numbers = #tpu.dot_dimension_numbers<[1], [0], [0], [1], [0, 0, 1, 1], [], []>} : vector<32x32xbf16>, vector<32x32xbf16>, vector<32x32xf32> -> vector<32x32xf32>
    %21 = vector.broadcast %11 : vector<1x32xf32> to vector<32x32xf32>
    %22 = arith.addf %20, %21 : vector<32x32xf32>
    %cst_22 = arith.constant 0.000000e+00 : f32
    %23 = vector.broadcast %cst_22 : f32 to vector<32x32xf32>
    %24 = arith.maximumf %22, %23 : vector<32x32xf32>
    %25 = arith.truncf %24 : vector<32x32xf32> to vector<32x32xbf16>
    %cst_23 = arith.constant dense<0.000000e+00> : vector<32x32xf32>
    %26 = tpu.matmul %25, %7, %cst_23 {dimension_numbers = #tpu.dot_dimension_numbers<[1], [0], [0], [1], [0, 0, 1, 1], [], []>} : vector<32x32xbf16>, vector<32x32xbf16>, vector<32x32xf32> -> vector<32x32xf32>
    %27 = vector.broadcast %13 : vector<1x32xf32> to vector<32x32xf32>
    %28 = arith.addf %26, %27 : vector<32x32xf32>
    %29 = vector.shape_cast %28 : vector<32x32xf32> to vector<2x16x32xf32>
    %30 = vector.extract_strided_slice %29 {offsets = [0, 0, 0], sizes = [2, 8, 32], strides = [1, 1, 1]} : vector<2x16x32xf32> to vector<2x8x32xf32>
    %31 = vector.extract_strided_slice %29 {offsets = [0, 8, 0], sizes = [2, 8, 32], strides = [1, 1, 1]} : vector<2x16x32xf32> to vector<2x8x32xf32>
    "tpu.trace_start"() <{level = 10 : i32, message = "nse,nfe->nsf"}> : () -> ()
    %cst_24 = arith.constant dense<0.000000e+00> : vector<2x8x8xf32>
    %32 = tpu.matmul %30, %31, %cst_24 {dimension_numbers = #tpu.dot_dimension_numbers<[2], [2], [1], [1], [0, 0, 0, 1, 1, 1], [0], [0]>} : vector<2x8x32xf32>, vector<2x8x32xf32>, vector<2x8x8xf32> -> vector<2x8x8xf32>
    "tpu.trace_stop"() : () -> ()
    %c0_25 = arith.constant 0 : index
    %c0_26 = arith.constant 0 : index
    %c0_27 = arith.constant 0 : index
    %c0_28 = arith.constant 0 : index
    %33 = vector.load %arg9[%c0_25, %c0_26, %c0_27, %c0_28] : memref<1x2x8x8xf32, #tpu.memory_space<vmem>>, vector<1x2x8x8xf32>
    %34 = vector.shape_cast %33 : vector<1x2x8x8xf32> to vector<2x8x8xf32>
    %35 = vector.shape_cast %32 : vector<2x8x8xf32> to vector<1x2x8x8xf32>
    tpu.vector_store %arg9[%c0_25, %c0_26, %c0_27, %c0_28], %35 {strides = array<i32>} : memref<1x2x8x8xf32, #tpu.memory_space<vmem>>, vector<1x2x8x8xf32>,
    return
  }
  func.func @transform_0(%arg0: i32, %arg1: i32) -> (i32, i32, i32) {
    %c0_i32 = arith.constant 0 : i32
    %c0_i32_0 = arith.constant 0 : i32
    %c0_i32_1 = arith.constant 0 : i32
    return %arg0, %c0_i32, %c0_i32_0 : i32, i32, i32
  }
  func.func @transform_1(%arg0: i32, %arg1: i32) -> (i32, i32, i32) {
    %c0_i32 = arith.constant 0 : i32
    %c0_i32_0 = arith.constant 0 : i32
    %c0_i32_1 = arith.constant 0 : i32
    return %arg1, %c0_i32, %c0_i32_0 : i32, i32, i32
  }
  func.func @transform_2(%arg0: i32, %arg1: i32) -> (i32, i32, i32) {
    %c0_i32 = arith.constant 0 : i32
    %c0_i32_0 = arith.constant 0 : i32
    %c0_i32_1 = arith.constant 0 : i32
    return %arg1, %c0_i32, %c0_i32_0 : i32, i32, i32
  }
  func.func @transform_3(%arg0: i32, %arg1: i32) -> (i32, i32, i32) {
    %c0_i32 = arith.constant 0 : i32
    %c0_i32_0 = arith.constant 0 : i32
    %c0_i32_1 = arith.constant 0 : i32
    return %arg1, %c0_i32, %c0_i32_0 : i32, i32, i32
  }
  func.func @transform_4(%arg0: i32, %arg1: i32) -> (i32, i32, i32) {
    %c0_i32 = arith.constant 0 : i32
    %c0_i32_0 = arith.constant 0 : i32
    %c0_i32_1 = arith.constant 0 : i32
    return %arg1, %c0_i32, %c0_i32_0 : i32, i32, i32
  }
  func.func @transform_5(%arg0: i32, %arg1: i32) -> (i32, i32, i32) {
    %c0_i32 = arith.constant 0 : i32
    %c0_i32_0 = arith.constant 0 : i32
    %c0_i32_1 = arith.constant 0 : i32
    return %arg1, %c0_i32, %c0_i32_0 : i32, i32, i32
  }
  func.func @transform_6(%arg0: i32, %arg1: i32) -> (i32, i32, i32) {
    %c0_i32 = arith.constant 0 : i32
    %c0_i32_0 = arith.constant 0 : i32
    %c0_i32_1 = arith.constant 0 : i32
    return %arg1, %c0_i32, %c0_i32_0 : i32, i32, i32
  }
  func.func @transform_7(%arg0: i32, %arg1: i32) -> (i32, i32, i32, i32) {
    %c0_i32 = arith.constant 0 : i32
    %c0_i32_0 = arith.constant 0 : i32
    %c0_i32_1 = arith.constant 0 : i32
    return %arg1, %arg0, %c0_i32, %c0_i32_0 : i32, i32, i32, i32
  }
}

module attributes {stable_mosaic.version = 11 : i64} {
  func.func @_trunk_kernel(%arg0: i32, %arg1: i32, %arg2: memref<2x16x32xbf16, #tpu.memory_space<vmem>>, %arg3: memref<1x32x32xbf16, #tpu.memory_space<vmem>>, %arg4: memref<1x1x32xf32, #tpu.memory_space<vmem>>, %arg5: memref<1x32x32xbf16, #tpu.memory_space<vmem>>, %arg6: memref<1x1x32xf32, #tpu.memory_space<vmem>>, %arg7: memref<1x32x32xbf16, #tpu.memory_space<vmem>>, %arg8: memref<1x1x32xf32, #tpu.memory_space<vmem>>, %arg9: memref<1x2x8x8xf32, #tpu.memory_space<vmem>>) attributes {dimension_semantics = [#tpu.dimension_semantics<parallel>, #tpu.dimension_semantics<parallel>], iteration_bounds = array<i64: 1, 3>, scalar_prefetch = 0 : i64, scratch_operands = 0 : i64, tpu.core_type = #tpu.core_type<tc>, window_params = [{transform_indices = @transform_0, window_bounds = array<i64: 2, 16, 32>}, {transform_indices = @transform_1, window_bounds = array<i64: 1, 32, 32>}, {transform_indices = @transform_2, window_bounds = array<i64: 1, 1, 32>}, {transform_indices = @transform_3, window_bounds = array<i64: 1, 32, 32>}, {transform_indices = @transform_4, window_bounds = array<i64: 1, 1, 32>}, {transform_indices = @transform_5, window_bounds = array<i64: 1, 32, 32>}, {transform_indices = @transform_6, window_bounds = array<i64: 1, 1, 32>}, {transform_indices = @transform_7, window_bounds = array<i64: 1, 2, 8, 8>}]} {
    %c0 = arith.constant 0 : index
    %c0_0 = arith.constant 0 : index
    %c0_1 = arith.constant 0 : index
    %0 = vector.load %arg2[%c0, %c0_0, %c0_1] : memref<2x16x32xbf16, #tpu.memory_space<vmem>>, vector<2x16x32xbf16>
    %1 = vector.shape_cast %0 : vector<2x16x32xbf16> to vector<32x32xbf16>
    %c0_2 = arith.constant 0 : index
    %c0_3 = arith.constant 0 : index
    %c0_4 = arith.constant 0 : index
    %2 = vector.load %arg3[%c0_2, %c0_3, %c0_4] : memref<1x32x32xbf16, #tpu.memory_space<vmem>>, vector<1x32x32xbf16>
    %3 = vector.shape_cast %2 : vector<1x32x32xbf16> to vector<32x32xbf16>
    %c0_5 = arith.constant 0 : index
    %c0_6 = arith.constant 0 : index
    %c0_7 = arith.constant 0 : index
    %4 = vector.load %arg5[%c0_5, %c0_6, %c0_7] : memref<1x32x32xbf16, #tpu.memory_space<vmem>>, vector<1x32x32xbf16>
    %5 = vector.shape_cast %4 : vector<1x32x32xbf16> to vector<32x32xbf16>
    %c0_8 = arith.constant 0 : index
    %c0_9 = arith.constant 0 : index
    %c0_10 = arith.constant 0 : index
    %6 = vector.load %arg7[%c0_8, %c0_9, %c0_10] : memref<1x32x32xbf16, #tpu.memory_space<vmem>>, vector<1x32x32xbf16>
    %7 = vector.shape_cast %6 : vector<1x32x32xbf16> to vector<32x32xbf16>
    %c0_11 = arith.constant 0 : index
    %c0_12 = arith.constant 0 : index
    %c0_13 = arith.constant 0 : index
    %8 = vector.load %arg4[%c0_11, %c0_12, %c0_13] : memref<1x1x32xf32, #tpu.memory_space<vmem>>, vector<1x1x32xf32>
    %9 = vector.shape_cast %8 : vector<1x1x32xf32> to vector<1x32xf32>
    %c0_14 = arith.constant 0 : index
    %c0_15 = arith.constant 0 : index
    %c0_16 = arith.constant 0 : index
    %10 = vector.load %arg6[%c0_14, %c0_15, %c0_16] : memref<1x1x32xf32, #tpu.memory_space<vmem>>, vector<1x1x32xf32>
    %11 = vector.shape_cast %10 : vector<1x1x32xf32> to vector<1x32xf32>
    %c0_17 = arith.constant 0 : index
    %c0_18 = arith.constant 0 : index
    %c0_19 = arith.constant 0 : index
    %12 = vector.load %arg8[%c0_17, %c0_18, %c0_19] : memref<1x1x32xf32, #tpu.memory_space<vmem>>, vector<1x1x32xf32>
    %13 = vector.shape_cast %12 : vector<1x1x32xf32> to vector<1x32xf32>
    %cst = arith.constant dense<0.000000e+00> : vector<32x32xf32>
    %14 = tpu.matmul %1, %3, %cst {dimension_numbers = #tpu.dot_dimension_numbers<[1], [0], [0], [1], [0, 0, 1, 1], [], []>} : vector<32x32xbf16>, vector<32x32xbf16>, vector<32x32xf32> -> vector<32x32xf32>
    %15 = vector.broadcast %9 : vector<1x32xf32> to vector<32x32xf32>
    %16 = arith.addf %14, %15 : vector<32x32xf32>
    %cst_20 = arith.constant 0.000000e+00 : f32
    %17 = vector.broadcast %cst_20 : f32 to vector<32x32xf32>
    %18 = arith.maximumf %16, %17 : vector<32x32xf32>
    %19 = arith.truncf %18 : vector<32x32xf32> to vector<32x32xbf16>
    %cst_21 = arith.constant dense<0.000000e+00> : vector<32x32xf32>
    %20 = tpu.matmul %19, %5, %cst_21 {dimension_numbers = #tpu.dot_dimension_numbers<[1], [0], [0], [1], [0, 0, 1, 1], [], []>} : vector<32x32xbf16>, vector<32x32xbf16>, vector<32x32xf32> -> vector<32x32xf32>
    %21 = vector.broadcast %11 : vector<1x32xf32> to vector<32x32xf32>
    %22 = arith.addf %20, %21 : vector<32x32xf32>
    %cst_22 = arith.constant 0.000000e+00 : f32
    %23 = vector.broadcast %cst_22 : f32 to vector<32x32xf32>
    %24 = arith.maximumf %22, %23 : vector<32x32xf32>
    %25 = arith.truncf %24 : vector<32x32xf32> to vector<32x32xbf16>
    %cst_23 = arith.constant dense<0.000000e+00> : vector<32x32xf32>
    %26 = tpu.matmul %25, %7, %cst_23 {dimension_numbers = #tpu.dot_dimension_numbers<[1], [0], [0], [1], [0, 0, 1, 1], [], []>} : vector<32x32xbf16>, vector<32x32xbf16>, vector<32x32xf32> -> vector<32x32xf32>
    %27 = vector.broadcast %13 : vector<1x32xf32> to vector<32x32xf32>
    %28 = arith.addf %26, %27 : vector<32x32xf32>
    %29 = vector.shape_cast %28 : vector<32x32xf32> to vector<2x16x32xf32>
    %30 = vector.extract_strided_slice %29 {offsets = [0, 0, 0], sizes = [2, 8, 32], strides = [1, 1, 1]} : vector<2x16x32xf32> to vector<2x8x32xf32>
    %31 = vector.extract_strided_slice %29 {offsets = [0, 8, 0], sizes = [2, 8, 32], strides = [1, 1, 1]} : vector<2x16x32xf32> to vector<2x8x32xf32>
    "tpu.trace_start"() <{level = 10 : i32, message = "nse,nfe->nsf"}> : () -> ()
    %cst_24 = arith.constant dense<0.000000e+00> : vector<2x8x8xf32>
    %32 = tpu.matmul %30, %31, %cst_24 {dimension_numbers = #tpu.dot_dimension_numbers<[2], [2], [1], [1], [0, 0, 0, 1, 1, 1], [0], [0]>} : vector<2x8x32xf32>, vector<2x8x32xf32>, vector<2x8x8xf32> -> vector<2x8x8xf32>
    "tpu.trace_stop"() : () -> ()
    %c0_25 = arith.constant 0 : index
    %c0_26 = arith.constant 0 : index
    %c0_27 = arith.constant 0 : index
    %c0_28 = arith.constant 0 : index
    %33 = vector.load %arg9[%c0_25, %c0_26, %c0_27, %c0_28] : memref<1x2x8x8xf32, #tpu.memory_space<vmem>>, vector<1x2x8x8xf32>
    %34 = vector.shape_cast %33 : vector<1x2x8x8xf32> to vector<2x8x8xf32>
    %35 = vector.shape_cast %32 : vector<2x8x8xf32> to vector<1x2x8x8xf32>
    tpu.vector_store %arg9[%c0_25, %c0_26, %c0_27, %c0_28], %35 {strides = array<i32>} : memref<1x2x8x8xf32, #tpu.memory_space<vmem>>, vector<1x2x8x8xf32>,
    return
  }
  func.func @transform_0(%arg0: i32, %arg1: i32) -> (i32, i32, i32) {
    %c0_i32 = arith.constant 0 : i32
    %c0_i32_0 = arith.constant 0 : i32
    %c0_i32_1 = arith.constant 0 : i32
    return %arg0, %c0_i32, %c0_i32_0 : i32, i32, i32
  }
  func.func @transform_1(%arg0: i32, %arg1: i32) -> (i32, i32, i32) {
    %c0_i32 = arith.constant 0 : i32
    %c0_i32_0 = arith.constant 0 : i32
    %c0_i32_1 = arith.constant 0 : i32
    return %arg1, %c0_i32, %c0_i32_0 : i32, i32, i32
  }
  func.func @transform_2(%arg0: i32, %arg1: i32) -> (i32, i32, i32) {
    %c0_i32 = arith.constant 0 : i32
    %c0_i32_0 = arith.constant 0 : i32
    %c0_i32_1 = arith.constant 0 : i32
    return %arg1, %c0_i32, %c0_i32_0 : i32, i32, i32
  }
  func.func @transform_3(%arg0: i32, %arg1: i32) -> (i32, i32, i32) {
    %c0_i32 = arith.constant 0 : i32
    %c0_i32_0 = arith.constant 0 : i32
    %c0_i32_1 = arith.constant 0 : i32
    return %arg1, %c0_i32, %c0_i32_0 : i32, i32, i32
  }
  func.func @transform_4(%arg0: i32, %arg1: i32) -> (i32, i32, i32) {
    %c0_i32 = arith.constant 0 : i32
    %c0_i32_0 = arith.constant 0 : i32
    %c0_i32_1 = arith.constant 0 : i32
    return %arg1, %c0_i32, %c0_i32_0 : i32, i32, i32
  }
  func.func @transform_5(%arg0: i32, %arg1: i32) -> (i32, i32, i32) {
    %c0_i32 = arith.constant 0 : i32
    %c0_i32_0 = arith.constant 0 : i32
    %c0_i32_1 = arith.constant 0 : i32
    return %arg1, %c0_i32, %c0_i32_0 : i32, i32, i32
  }
  func.func @transform_6(%arg0: i32, %arg1: i32) -> (i32, i32, i32) {
    %c0_i32 = arith.constant 0 : i32
    %c0_i32_0 = arith.constant 0 : i32
    %c0_i32_1 = arith.constant 0 : i32
    return %arg1, %c0_i32, %c0_i32_0 : i32, i32, i32
  }
  func.func @transform_7(%arg0: i32, %arg1: i32) -> (i32, i32, i32, i32) {
    %c0_i32 = arith.constant 0 : i32
    %c0_i32_0 = arith.constant 0 : i32
    %c0_i32_1 = arith.constant 0 : i32
    return %arg1, %arg0, %c0_i32, %c0_i32_0 : i32, i32, i32, i32
  }
}

</mosaic_0001>

<bundles_post_ra>
// kernel: tpu_custom_call.1
= control target key start
LH: loop header
LB: loop body
LE: loop exit
PB: predicated region body
PF: predicated region fallthrough
CT: control target
= control target key end

     0   :  { %s1782_s0 = inlined_call_operand.hbm [shape: bf16[2,16,32], index: 0, kind: input, shape index: {}]   ;;  %s1783_s1 = inlined_call_operand.hbm [shape: bf16[3,32,32], index: 1, kind: input, shape index: {}]   ;;  %s1784_s2 = inlined_call_operand.vmem [shape: f32[3,1,32], index: 2, kind: input, shape index: {}]   ;;  %s1785_s3 = inlined_call_operand.hbm [shape: bf16[3,32,32], index: 3, kind: input, shape index: {}]   ;;  %s1786_s4 = inlined_call_operand.vmem [shape: f32[3,1,32], index: 4, kind: input, shape index: {}]   ;;  %s1787_s5 = inlined_call_operand.hbm [shape: bf16[3,32,32], index: 5, kind: input, shape index: {}]   ;;  %s1788_s6 = inlined_call_operand.vmem [shape: f32[3,1,32], index: 6, kind: input, shape index: {}]   ;;  %s1789_s7 = inlined_call_operand.hbm [shape: f32[3,2,8,8], index: 7, kind: output, shape index: {}]  }
   0x1   :  { %1801 = sst [smem:[#allocation20_spill]] %s1783_s1 }
   0x2   :  { %1802 = sst [smem:[#allocation21_spill]] %s1785_s3 }
   0x3   :  { %12 = vsyncpa [#allocation3], 0 }
   0x4   :  { %13 = vsyncpa [#allocation6], 0 }
   0x5   :  { %15 = vsyncpa [#allocation6 + $0x1], 0 }
   0x6   :  { %16 = vsyncpa [#allocation9], 0 }
   0x7   :  { %18 = vsyncpa [#allocation9 + $0x1], 0 }
   0x8   :  { %19 = vsyncpa [#allocation4], 0 }
   0x9   :  { %21 = vsyncpa [#allocation4 + $0x1], 0  ;;  %s1505_s24 = smov 0   ;;  %s1507_s25 = smov 0  }
   0xa   :  { %s1509_s26 = smov 0   ;;  %s1511_s27 = smov 0  }
   0xb   :  { %s1513_s28 = smov 0   ;;  %s1515_s29 = smov 0  }
   0xc LB: > { %1803 = sst [smem:[#allocation15_spill]] %s1432_s24  ;;  %s36_s30 = sadd.s32 1, %s1448_s28  ;;  %s1452_s29 = sphi %s1515_s29, %s27_s29   ;;  %s1448_s28 = sphi %s1513_s28, %s1828_s28   ;;  %s1444_s27 = sphi %s1511_s27, %s1827_s27   ;;  %s1440_s26 = sphi %s1509_s26, %s1831_s26   ;;  %s1436_s25 = sphi %s1507_s25, %s1830_s25   ;;  %s1432_s24 = sphi %s1505_s24, %s1829_s24  }
   0xd   : > { %1804 = sst [smem:[#allocation16_spill]] %s1448_s28  ;;  %s72_s8 = sadd.s32 1, %s1440_s26 }
   0xe   : > { %p37_p0 = scmp.ge.s32.totalorder %s36_s30, 3  ;;  %p79_p1 = scmp.ne.s32.totalorder %s1440_s26, %s1436_s25 }
   0xf   : > { %p80_p2 = scmp.eq.s32.totalorder %s1452_s29, 0  ;;  %p1188_p5 = scmp.lt.s32.totalorder %s1452_s29, 3 }
  0x10   : > { %s1833_s30 = smov (%p37_p0, %s36_s30), 0  ;;  %s284_s11 = sand.u32 1, %s1452_s29  }
  0x11   : > { %1805 = sst [smem:[#allocation17_spill]] %s1833_s30  ;;  %p1545_p3 = por %p80_p2, %p79_p1 }
  0x12   : > { %s69_s10 = ssub.s32 %s1448_s28, %s1833_s30  ;;  %s1790_s12 = sand.u32 1, %s1440_s26  }
  0x13   : > { %p70_p4 = scmp.eq.s32.totalorder %s69_s10, 0  ;;  %s1559_s14 = sshll.u32 %s1790_s12, 4 }
  0x14   : > { %s1562_s15 = sshll.u32 %s1448_s28, 8  ;;  %s1808_s1 = sld [smem:[#allocation20_spill]] }
  0x15   : > { %s1555_s13 = scalar_select %p70_p4, %s1440_s26, %s72_s8  }
  0x16   : > { %s288_s19 = scalar_lea.vmem [#allocation5], %s1559_s14  ;;  %p1571_p6 = pnand %p1188_p5, %p1545_p3 }
  0x17   : > { %1807 = sst [smem:[#allocation18_spill]] %s1555_s13  ;;  %s295_s20 = sshll.u32 %s288_s19, 4  ;;  %s296_s20 = int_to_ptr.vmem [resolvable:$true] %s295_s20 }
  0x18   : > { %s1575_s22 = scalar_lea.sflag [#allocation6], %s284_s11  ;;  %p1256_p7 = pneg %p1571_p6 }
  0x19   : > { %s1267_s23 = scalar_lea.vmem %s296_s20, 256  ;;  %s1454_s8 = smov [#allocation5]  }
  0x1a   : > { %s294_s18 = scalar_lea.hbm %s1808_s1, %s1562_s15  ;;  %p1268_p8 = scmp.ne.s32.totalorder %s296_s20, %s1267_s23 }
  0x1b   : > { %s1272_s10 = sshll.u32 %s1454_s8, 4  ;;  %s1273_s10 = int_to_ptr.vmem [resolvable:$false] %s1272_s10 }
  0x1c   : > { %p1270_p9 = pnand %p1268_p8, %p1256_p7  ;;  %s1274_s9 = scalar_lea.vmem %s1273_s10, 512 }
  0x1d   : > { %p1275_p11 = scmp.lt.s32.totalorder %s296_s20, %s1273_s10  ;;  %p1276_p12 = scmp.lt.s32.totalorder %s1274_s9, %s1267_s23 }
  0x1e   : > { %p1271_p10 = pneg %p1270_p9 }
  0x1f   : > { %p1277_p13 = por %p1276_p12, %p1275_p11 }
  0x21   : > { %p1278_p0 = pnand %p1277_p13, %p1271_p10 }
  0x23   : > { %1281 = shalt.err (!%p1278_p0)
}
  0x24   : > { %s1791_s16 = smov 64   ;;  %s1793_s11 = smov 4  }
  0x25   : > { %1176 = dma.hbm_to_vmem [thread:$0]  (!%p1571_p6), %s294_s18, 256, %s296_s20, %s1575_s22, %s1791_s16, %s1791_s16, %s1793_s11  }
  0x26   : > { %s1589_s17 = sadd.s32 4294967295, %s1452_s29   ;;  %s1058_s19 = sadd.s32 4294967294, %s1452_s29  }
  0x27   : > { %p85_p2 = scmp.ne.s32.totalorder %s1436_s25, %s1432_s24  ;;  %p1799_p3 = scmp.eq.s32.totalorder %s1589_s17, 0 }
  0x28   : > { %p241_p4 = scmp.eq.s32.totalorder %s1589_s17, 2  ;;  %p247_p5 = scmp.eq.s32.totalorder %s1058_s19, 2 }
  0x29   : > { %p1059_p8 = scmp.ge.s32.totalorder %s1452_s29, 1  ;;  %p1599_p9 = por %p1799_p3, %p85_p2 }
  0x2a   : > { %p1606_p10 = por %p241_p4, %p79_p1  ;;  %p1610_p11 = por %p247_p5, %p85_p2 }
  0x2b   : > { %p254_p12 = scmp.lt.s32.totalorder %s1452_s29, 4  ;;  %s1457_s10 = smov [#allocation2]  }
  0x2c   : > { %s1811_s18 = scalar_select %p1606_p10, 1, 0 }
  0x2d   : > { %s1812_s20 = scalar_select %p1610_p11, 1, 0 }
  0x2e   : > { %p1615_p13 = pnand %p1059_p8, %p254_p12  ;;  %s270_s9 = sshll.u32 %s1457_s10, 4  ;;  %s1619_s9 = int_to_ptr.vmem [resolvable:$true] %s270_s9 }
  0x2f   : > { %1813 = sst [smem:[#allocation19_spill]] %s1812_s20  ;;  %s315_s11 = scalar_lea.vmem [#allocation7], %s1559_s14 }
  0x30   : > { %p1169_p0 = pneg %p1615_p13  ;;  %s1815_s3 = sld [smem:[#allocation21_spill]] }
  0x31   : > { %s322_s1 = sshll.u32 %s315_s11, 4  ;;  %s1458_s10 = smov [#allocation7]   ;;  %s323_s1 = int_to_ptr.vmem [resolvable:$true] %s322_s1 }
  0x32   : > { %p1630_p1 = pnand %p1169_p0, %p1799_p3  ;;  %s1295_s28 = scalar_lea.vmem %s323_s1, 256 }
  0x33   : > { %p1296_p2 = scmp.ne.s32.totalorder %s323_s1, %s1295_s28  ;;  %s1300_s13 = sshll.u32 %s1458_s10, 4  ;;  %s1301_s13 = int_to_ptr.vmem [resolvable:$false] %s1300_s13 }
  0x34   : > { %s1302_s20 = scalar_lea.vmem %s1301_s13, 512  ;;  %p1303_p8 = scmp.lt.s32.totalorder %s323_s1, %s1301_s13 }
  0x35   : > { %p1298_p4 = pnand %p1296_p2, %p1256_p7  ;;  %p1304_p12 = scmp.lt.s32.totalorder %s1302_s20, %s1295_s28 }
  0x36   : > { %s321_s16 = scalar_lea.hbm %s1815_s3, %s1562_s15 }
  0x37   : > { %p1299_p5 = pneg %p1298_p4  ;;  %p1305_p11 = por %p1304_p12, %p1303_p8 }
  0x39   : > { %p1306_p10 = pnand %p1305_p11, %p1299_p5 }
  0x3b   : > { %1309 = shalt.err (!%p1306_p10)
}
  0x3c   : > { %s1817_s12 = smov 4   ;;  %s1818_s11 = smov 64  }
  0x3d   : > { %1179 = dma.hbm_to_vmem [thread:$0]  (!%p1571_p6), %s321_s16, 256, %s323_s1, %s1575_s22, %s1818_s11, %s1818_s11, %s1817_s12  }
  0x3e   : > { %p1312_p0 = pneg %p1630_p1  ;;  %s1321_s19 = scalar_lea.vmem %s1619_s9, 256 }
  0x3f   : > { %p1322_p2 = scmp.ne.s32.totalorder %s1619_s9, %s1321_s19  ;;  %p1329_p11 = scmp.lt.s32.totalorder %s1619_s9, %s1619_s9 }
  0x40   : > { %p1330_p10 = scmp.lt.s32.totalorder %s1321_s19, %s1321_s19 }
  0x41   : > { %p1324_p4 = pnand %p1322_p2, %p1312_p0 }
  0x42   : > { %p1331_p5 = por %p1330_p10, %p1329_p11 }
  0x43   : > { %p1325_p3 = pneg %p1324_p4 }
  0x45   : > { %p1332_p8 = pnand %p1331_p5, %p1325_p3 }
  0x47   : > { %1335 = shalt.err (!%p1332_p8)
}
  0x48   : > { %1172 = dma.hbm_to_vmem [thread:$0]  (!%p1630_p1), %s1782_s0, 256, %s1619_s9, [#allocation3], %s1818_s11, %s1818_s11, %s1817_s12  }
  0x49   : > { %s348_s16 = scalar_lea.hbm %s1787_s5, %s1562_s15  ;;  %s342_s20 = scalar_lea.vmem [#allocation8], %s1559_s14 }
  0x4a   : > { %s349_s10 = sshll.u32 %s342_s20, 4  ;;  %s1819_s30 = sand.u32 1, %s1440_s26   ;;  %s350_s10 = int_to_ptr.vmem [resolvable:$true] %s349_s10 }
  0x4b   : > { %s339_s19 = scalar_lea.sflag [#allocation9], %s1819_s30  ;;  %s1349_s3 = scalar_lea.vmem %s350_s10, 256 }
  0x4c   : > { %p1350_p3 = scmp.ne.s32.totalorder %s350_s10, %s1349_s3  ;;  %s1459_s28 = smov [#allocation8]  }
  0x4d   : > { %s1354_s1 = sshll.u32 %s1459_s28, 4  ;;  %s1355_s1 = int_to_ptr.vmem [resolvable:$false] %s1354_s1 }
  0x4e   : > { %p1352_p12 = pnand %p1350_p3, %p1256_p7  ;;  %s1356_s24 = scalar_lea.vmem %s1355_s1, 512 }
  0x4f   : > { %p1357_p1 = scmp.lt.s32.totalorder %s350_s10, %s1355_s1  ;;  %p1358_p2 = scmp.lt.s32.totalorder %s1356_s24, %s1349_s3 }
  0x50   : > { %p1353_p0 = pneg %p1352_p12 }
  0x51   : > { %p1359_p4 = por %p1358_p2, %p1357_p1 }
  0x53   : > { %p1360_p11 = pnand %p1359_p4, %p1353_p0 }
  0x55   : > { %1363 = shalt.err (!%p1360_p11)
}
  0x56   : > { %1182 = dma.hbm_to_vmem [thread:$0]  (!%p1571_p6), %s348_s16, 256, %s350_s10, %s339_s19, %s1818_s11, %s1818_s11, %s1817_s12  }
  0x57   : > { %367 = sbr.rel (%p1615_p13) target bundleno = 937 (0x3a9), region = 48  ;;  %p1820_p7 = scmp.eq.s32.totalorder (!%p1615_p13), %s1589_s17, 0 }
  0x5c   : > { %1415 = dma.done.wait (%p1820_p7), [#allocation3], 256   ;;  %p1821_p10 = pmov %p1820_p7 }
  0x5d   : > { %s373_s3 = sand.u32 1, %s1589_s17   ;;  %s1681_s24 = sand.u32 1, %s1436_s25  }
  0x5e   : > { %1417 = vsyncadd (%p1821_p10), [#allocation3], 4294967040  ;;  %s1684_s14 = sshll.u32 %s1681_s24, 4  ;;  %s374_s15 = scalar_lea.sflag [#allocation6], %s373_s3 }
  0x5f   : > { %s377_s21 = scalar_lea.vmem [#allocation5], %s1684_s14 }
  0x60   : > { %1419 = dma.done.wait (%p1599_p9), %s374_s15, 512  }
  0x61   : > { %1421 = vsyncadd (%p1599_p9), %s374_s15, 4294966784  ;;  %s386_s8 = scalar_lea.vmem [#allocation7], %s1684_s14  ;;  %s392_s9 = scalar_lea.sflag [#allocation9], %s1681_s24 }
  0x62   : > { %s395_s17 = scalar_lea.vmem [#allocation8], %s1684_s14 }
  0x63   : > { %1423 = dma.done.wait (%p1599_p9), %s392_s9, 256  }
  0x64   : > { %1425 = vsyncadd (%p1599_p9), %s392_s9, 4294967040  ;;  %v1246_v0 = vld [vmem:[%s377_s21 + $0x8] sm:$0xff]   ;;  %v1247_v1 = vld [vmem:[%s377_s21] sm:$0xff]   ;;  %vm504_vm0 = vcmask 261120   ;;  %p446_p6 = scmp.lt.s32.totalorder %s1444_s27, 2  ;;  %v1460_v38 = vmov 0.0  }
  0x65   : > { %1123 = vmatprep.subr.bf16.mxu0 %v1246_v0  ;;  %v1248_v2 = vld [vmem:[#allocation2] sm:$0xff]   ;;  %v1249_v3 = vld [vmem:[#allocation2 + $0x8] sm:$0xff]   ;;  %vm1461_vm1 = vmmov 0   ;;  %vm870_vm2 = vcmask 64512   ;;  %s444_s28 = scalar_lea.vmem [#allocation10], %s1684_s14  ;;  %s1106_s3 = sshll.u32 %s1444_s27, 8 }
  0x66   : > { %1124 = vmatpush3.bf16.msra.mxu0 %v1246_v0  ;;  %1127 = vmatprep.mubr.msk.bf16.mxu0 %vm504_vm0, %v1248_v2  ;;  %v1250_v4 = vld [vmem:[%s386_s8 + $0x8] sm:$0xff]   ;;  %v1251_v5 = vld [vmem:[%s386_s8] sm:$0xff]   ;;  %s1702_s23 = scalar_select %p446_p6, %s1444_s27, 2 }
  0x67   : > { %1125 = vmatprep.subr.bf16.mxu0 %v1247_v1  ;;  %1131 = vmatprep.subr.bf16.mxu1 %v1250_v4  ;;  %v1252_v21 = vld [vmem:[%s395_s17 + $0x8] sm:$0xff]   ;;  %v1253_v22 = vld [vmem:[%s395_s17] sm:$0xff]   ;;  %s889_s1 = sshll.u32 %s444_s28, 4  ;;  %s1735_s8 = scalar_lea.hbm %s1789_s7, %s1106_s3  ;;  %s1730_s1 = int_to_ptr.vmem [resolvable:$true] %s889_s1 }
  0x68   : > { %1132 = vmatpush3.bf16.msra.mxu1 %v1250_v4  ;;  %s448_s13 = scalar_lea.vmem %s1784_s2, %s1702_s23  ;;  %s451_s20 = scalar_lea.vmem %s1786_s4, %s1702_s23 }
  0x69   : > { %1133 = vmatprep.subr.bf16.mxu1 %v1251_v5  ;;  %v1077_v8 = vld [vmem:[%s448_s13] ss:$0 sm:$0xff]  ;;  %s454_s19 = scalar_lea.vmem %s1788_s6, %s1702_s23  ;;  %s874_s9 = scalar_lea.sflag [#allocation4], %s1681_s24 }
  0x6a   : > { %1126 = vmatpush3.bf16.msra.mxu0 %v1247_v1  ;;  %v1084_v25 = vld [vmem:[%s451_s20] ss:$0 sm:$0xff]  ;;  %s1364_s14 = scalar_lea.vmem %s1730_s1, 256  ;;  %p1822_p13 = scmp.ne.s32.totalorder %s1811_s18, 0 }
  0x6b   : > { %1139 = vmatprep.subr.bf16.mxu0 %v1252_v21  ;;  %v1089_v42 = vld [vmem:[%s454_s19] ss:$0 sm:$0xff]  ;;  %p1365_p9 = scmp.ne.s32.totalorder %s1730_s1, %s1364_s14  ;;  %s1462_s27 = smov [#allocation10]  }
  0x6c   : > { %1134 = vmatpush3.bf16.msra.mxu1 %v1251_v5  ;;  %s1368_s17 = sshll.u32 %s1462_s27, 4  ;;  %s1369_s17 = int_to_ptr.vmem [resolvable:$false] %s1368_s17 }
  0x6d   : > { %1128 = vmatmul.mubr.msk.bf16.vlgmr.msra.gmra.mxu0 %vm504_vm0, %v1249_v3  ;;  %1147 = vmatprep.subr.mxu1 %v1460_v38  ;;  %p1366_p5 = pnand %p1365_p9, %p1822_p13  ;;  %s1370_s23 = scalar_lea.vmem %s1369_s17, 512 }
  0x6e   : > { %1140 = vmatpush3.bf16.msra.mxu0 %v1252_v21  ;;  %p1371_p3 = scmp.lt.s32.totalorder %s1730_s1, %s1369_s17  ;;  %p1372_p12 = scmp.lt.s32.totalorder %s1370_s23, %s1364_s14 }
  0x6f   : > { %1141 = vmatprep.subr.bf16.mxu0 %v1253_v22  ;;  %p1367_p8 = pneg %p1366_p5 }
  0x70   : > { %p1373_p0 = por %p1372_p12, %p1371_p3 }
  0x72   : > { %1142 = vmatpush3.bf16.msra.mxu0 %v1253_v22  ;;  %p1374_p1 = pnand %p1373_p0, %p1367_p8 }
 0x12d   : > { %v1129_v6 = vpop.f32.mrf.mxu0 }
 0x12e   : > { %v554_v12 = vadd.f32 %v1129_v6, %v1077_v8 }
 0x12f   : > { %v545_v7 = vpop.f32.mrf.mxu0 }
 0x130   : > { %v546_v10 = vadd.f32 %v1077_v8, %v545_v7  ;;  %v562_v18 = vmax.f32 %v554_v12, 0.0 }
 0x131   : > { %v1130_v9 = vpop.f32.mrf.mxu0 }
 0x132   : > { %v557_v11 = vadd.f32 %v1130_v9, %v1077_v8  ;;  %v560_v16 = vmax.f32 %v546_v10, 0.0 }
 0x133   : > { %v548_v13 = vpop.f32.mrf.mxu0 }
 0x134   : > { %v549_v14 = vadd.f32 %v1077_v8, %v548_v13  ;;  %v563_v15 = vmax.f32 %v557_v11, 0.0 }
 0x136   : > { %v561_v17 = vmax.f32 %v549_v14, 0.0  ;;  %v565_v20 = vpack.c.bf16 %v563_v15, %v562_v18 }
 0x138   : > { %v564_v19 = vpack.c.bf16 %v561_v17, %v560_v16 }
 0x13a   : > { %1135 = vmatprep.mubr.msk.bf16.mxu1 %vm504_vm0, %v564_v19 }
 0x13b   : > { %1136 = vmatmul.mubr.msk.bf16.vlgmr.msra.gmra.mxu1 %vm504_vm0, %v565_v20 }
 0x13c   : > { %1149 = vmatprep.mubr.msk.f32.mxu1 %vm1461_vm1, %v1460_v38 }
 0x1fb   : > { %v1137_v23 = vpop.f32.mrf.mxu1 }
 0x1fc   : > { %v633_v29 = vadd.f32 %v1137_v23, %v1084_v25 }
 0x1fd   : > { %v624_v24 = vpop.f32.mrf.mxu1 }
 0x1fe   : > { %v625_v27 = vadd.f32 %v1084_v25, %v624_v24  ;;  %v641_v35 = vmax.f32 %v633_v29, 0.0 }
 0x1ff   : > { %v1138_v26 = vpop.f32.mrf.mxu1 }
 0x200   : > { %v636_v28 = vadd.f32 %v1138_v26, %v1084_v25  ;;  %v639_v33 = vmax.f32 %v625_v27, 0.0 }
 0x201   : > { %v627_v30 = vpop.f32.mrf.mxu1 }
 0x202   : > { %v628_v31 = vadd.f32 %v1084_v25, %v627_v30  ;;  %v642_v32 = vmax.f32 %v636_v28, 0.0 }
 0x204   : > { %v640_v34 = vmax.f32 %v628_v31, 0.0  ;;  %v644_v37 = vpack.c.bf16 %v642_v32, %v641_v35 }
 0x206   : > { %v643_v36 = vpack.c.bf16 %v640_v34, %v639_v33 }
 0x208   : > { %1143 = vmatprep.mubr.msk.bf16.mxu0 %vm504_vm0, %v643_v36 }
 0x209   : > { %1144 = vmatmul.mubr.msk.bf16.vlgmr.msra.gmra.mxu0 %vm504_vm0, %v644_v37 }
 0x2c9   : > { %v1145_v39 = vpop.f32.mrf.mxu0 }
 0x2ca   : > { %v712_v47 = vadd.f32 %v1145_v39, %v1089_v42 }
 0x2cb   : > { %v703_v40 = vpop.f32.mrf.mxu0 }
 0x2cc   : > { %v704_v45 = vadd.f32 %v1089_v42, %v703_v40 }
 0x2cd   : > { %v1146_v41 = vpop.f32.mrf.mxu0 }
 0x2ce   : > { %v715_v46 = vadd.f32 %v1146_v41, %v1089_v42 }
 0x2cf   : > { %v706_v43 = vpop.f32.mrf.mxu0 }
 0x2d0   : > { %v707_v44 = vadd.f32 %v1089_v42, %v706_v43 }
 0x2d2   : > { %1148 = vmatpush3.xpose.msk.msra.mxu1 %vm504_vm0, %v707_v44 }
 0x2d3   : > { %1152 = vmatprep.subr.mxu1 %v1460_v38 }
 0x2d5   : > { %1150 = vmatmul.mubr.msk.f32.vlgmr.msra.gmra.mxu1 %vm504_vm0, %v704_v45 }
 0x2d6   : > { %1153 = vmatpush3.xpose.msk.msra.mxu1 %vm504_vm0, %v715_v46  ;;  %1154 = vmatprep.mubr.msk.f32.mxu1 %vm1461_vm1, %v1460_v38 }
 0x2d9   : > { %1155 = vmatmul.mubr.msk.f32.vlgmr.msra.gmra.mxu1 %vm504_vm0, %v712_v47 }
 0x395   : > { %v790_v48 = vpop.f32.mrf.mxu1 }
 0x396   : > { %871 = vst.msk [vmem:[%s444_s28] sm:$0xff] %vm870_vm2, %v790_v48 }
 0x397   : > { %v1151_v49 = vpop.f32.mrf.mxu1 }
 0x399   : > { %v866_v50 = vpop.f32.mrf.mxu1 }
 0x39a   : > { %872 = vst.msk [vmem:[%s444_s28 + $0x8] sm:$0xff] %vm870_vm2, %v866_v50 }
 0x39b   : > { %v1156_v51 = vpop.f32.mrf.mxu1 }
 0x39c   : > { %1377 = shalt.err (!%p1374_p1)
}
 0x39d   : > { %s1378_s12 = scalar_lea.hbm %s1735_s8, 256  ;;  %s1382_s22 = scalar_lea.hbm %s1789_s7, 768 }
 0x39e   : > { %p1379_p2 = scmp.ne.s32.totalorder %s1735_s8, %s1378_s12  ;;  %p1383_p7 = scmp.lt.s32.totalorder %s1735_s8, %s1789_s7 }
 0x39f   : > { %p1384_p10 = scmp.lt.s32.totalorder %s1382_s22, %s1378_s12 }
 0x3a0   : > { %p1380_p4 = pnand %p1379_p2, %p1822_p13 }
 0x3a1   : > { %p1385_p6 = por %p1384_p10, %p1383_p7 }
 0x3a2   : > { %p1381_p11 = pneg %p1380_p4 }
 0x3a4   : > { %p1386_p9 = pnand %p1385_p6, %p1381_p11 }
 0x3a6   : > { %1389 = shalt.err (!%p1386_p9)
}
 0x3a7   : > { %s1463_s10 = smov 128   ;;  %s1464_s30 = smov 8  }
 0x3a8   : > { %1167 = dma.vmem_to_hbm [thread:$0]  (%p1822_p13), %s1730_s1, 256, %s1735_s8, %s874_s9, %s1463_s10, %s1463_s10, %s1464_s30  }
 0x3a9 PF: > { %s1823_s19 = sld [smem:[#allocation15_spill]]  ;;  %p1190_p5 = scmp.ge.s32.totalorder %s1452_s29, 2 }
 0x3aa   : > { %s1824_s28 = sld [smem:[#allocation19_spill]] }
 0x3af   : > { %s904_s3 = sand.u32 1, %s1823_s19  }
 0x3b0   : > { %p1825_p8 = scmp.ne.s32.totalorder %s1824_s28, 0  ;;  %s905_s15 = scalar_lea.sflag [#allocation4], %s904_s3 }
 0x3b2   : > { %p1184_p3 = pnand %p1190_p5, %p1825_p8 }
 0x3b4   : > { %p1185_p12 = pneg %p1184_p3 }
 0x3b6   : > { %1427 = dma.done.wait (%p1185_p12), %s905_s15, 256  }
 0x3b7   : > { %1429 = vsyncadd (%p1185_p12), %s905_s15, 4294967040  ;;  %s27_s29 = sadd.s32 1, %s1452_s29   ;;  %s1826_s18 = sld [smem:[#allocation18_spill]] }
 0x3b8   : > { %p24_p0 = scmp.ge.s32.totalorder %s27_s29, 5   ;;  %s1827_s27 = sld [smem:[#allocation16_spill]] }
 0x3b9   : > { %s1828_s28 = sld [smem:[#allocation17_spill]]  ;;  %s1829_s24 = smov %s1436_s25 }
 0x3ba   : > { %s1830_s25 = smov %s1440_s26  ;;  %26 = sbr.rel (!%p24_p0) target bundleno = 12 (0xc), region = 132 }
 0x3bd   : > { %s1831_s26 = smov %s1826_s18 }
 0x3bf   :  { %910 = vsyncpa [#allocation3], 1 }
 0x3c0   :  { %912 = vsyncpa [#allocation3 + $0x1], 1 }
 0x3c1   :  { %913 = vsyncpa [#allocation6], 1 }
 0x3c2   :  { %915 = vsyncpa [#allocation6 + $0x1], 1 }
 0x3c3   :  { %916 = vsyncpa [#allocation9], 1 }
 0x3c4   :  { %918 = vsyncpa [#allocation9 + $0x1], 1 }
 0x3c5   :  { %919 = vsyncpa [#allocation4], 1 }
 0x3c6   :  { %921 = vsyncpa [#allocation4 + $0x1], 1 }

// kernel: tpu_custom_call.1
= control target key start
LH: loop header
LB: loop body
LE: loop exit
PB: predicated region body
PF: predicated region fallthrough
CT: control target
= control target key end

     0   :  { %s1782_s0 = inlined_call_operand.hbm [shape: bf16[2,16,32], index: 0, kind: input, shape index: {}]   ;;  %s1783_s1 = inlined_call_operand.hbm [shape: bf16[3,32,32], index: 1, kind: input, shape index: {}]   ;;  %s1784_s2 = inlined_call_operand.vmem [shape: f32[3,1,32], index: 2, kind: input, shape index: {}]   ;;  %s1785_s3 = inlined_call_operand.hbm [shape: bf16[3,32,32], index: 3, kind: input, shape index: {}]   ;;  %s1786_s4 = inlined_call_operand.vmem [shape: f32[3,1,32], index: 4, kind: input, shape index: {}]   ;;  %s1787_s5 = inlined_call_operand.hbm [shape: bf16[3,32,32], index: 5, kind: input, shape index: {}]   ;;  %s1788_s6 = inlined_call_operand.vmem [shape: f32[3,1,32], index: 6, kind: input, shape index: {}]   ;;  %s1789_s7 = inlined_call_operand.hbm [shape: f32[3,2,8,8], index: 7, kind: output, shape index: {}]  }
   0x1   :  { %1801 = sst [smem:[#allocation20_spill]] %s1783_s1 }
   0x2   :  { %1802 = sst [smem:[#allocation21_spill]] %s1785_s3 }
   0x3   :  { %12 = vsyncpa [#allocation3], 0 }
   0x4   :  { %13 = vsyncpa [#allocation6], 0 }
   0x5   :  { %15 = vsyncpa [#allocation6 + $0x1], 0 }
   0x6   :  { %16 = vsyncpa [#allocation9], 0 }
   0x7   :  { %18 = vsyncpa [#allocation9 + $0x1], 0 }
   0x8   :  { %19 = vsyncpa [#allocation4], 0 }
   0x9   :  { %21 = vsyncpa [#allocation4 + $0x1], 0  ;;  %s1505_s24 = smov 0   ;;  %s1507_s25 = smov 0  }
   0xa   :  { %s1509_s26 = smov 0   ;;  %s1511_s27 = smov 0  }
   0xb   :  { %s1513_s28 = smov 0   ;;  %s1515_s29 = smov 0  }
   0xc LB: > { %1803 = sst [smem:[#allocation15_spill]] %s1432_s24  ;;  %s36_s30 = sadd.s32 1, %s1448_s28  ;;  %s1452_s29 = sphi %s1515_s29, %s27_s29   ;;  %s1448_s28 = sphi %s1513_s28, %s1828_s28   ;;  %s1444_s27 = sphi %s1511_s27, %s1827_s27   ;;  %s1440_s26 = sphi %s1509_s26, %s1831_s26   ;;  %s1436_s25 = sphi %s1507_s25, %s1830_s25   ;;  %s1432_s24 = sphi %s1505_s24, %s1829_s24  }
   0xd   : > { %1804 = sst [smem:[#allocation16_spill]] %s1448_s28  ;;  %s72_s8 = sadd.s32 1, %s1440_s26 }
   0xe   : > { %p37_p0 = scmp.ge.s32.totalorder %s36_s30, 3  ;;  %p79_p1 = scmp.ne.s32.totalorder %s1440_s26, %s1436_s25 }
   0xf   : > { %p80_p2 = scmp.eq.s32.totalorder %s1452_s29, 0  ;;  %p1188_p5 = scmp.lt.s32.totalorder %s1452_s29, 3 }
  0x10   : > { %s1833_s30 = smov (%p37_p0, %s36_s30), 0  ;;  %s284_s11 = sand.u32 1, %s1452_s29  }
  0x11   : > { %1805 = sst [smem:[#allocation17_spill]] %s1833_s30  ;;  %p1545_p3 = por %p80_p2, %p79_p1 }
  0x12   : > { %s69_s10 = ssub.s32 %s1448_s28, %s1833_s30  ;;  %s1790_s12 = sand.u32 1, %s1440_s26  }
  0x13   : > { %p70_p4 = scmp.eq.s32.totalorder %s69_s10, 0  ;;  %s1559_s14 = sshll.u32 %s1790_s12, 4 }
  0x14   : > { %s1562_s15 = sshll.u32 %s1448_s28, 8  ;;  %s1808_s1 = sld [smem:[#allocation20_spill]] }
  0x15   : > { %s1555_s13 = scalar_select %p70_p4, %s1440_s26, %s72_s8  }
  0x16   : > { %s288_s19 = scalar_lea.vmem [#allocation5], %s1559_s14  ;;  %p1571_p6 = pnand %p1188_p5, %p1545_p3 }
  0x17   : > { %1807 = sst [smem:[#allocation18_spill]] %s1555_s13  ;;  %s295_s20 = sshll.u32 %s288_s19, 4  ;;  %s296_s20 = int_to_ptr.vmem [resolvable:$true] %s295_s20 }
  0x18   : > { %s1575_s22 = scalar_lea.sflag [#allocation6], %s284_s11  ;;  %p1256_p7 = pneg %p1571_p6 }
  0x19   : > { %s1267_s23 = scalar_lea.vmem %s296_s20, 256  ;;  %s1454_s8 = smov [#allocation5]  }
  0x1a   : > { %s294_s18 = scalar_lea.hbm %s1808_s1, %s1562_s15  ;;  %p1268_p8 = scmp.ne.s32.totalorder %s296_s20, %s1267_s23 }
  0x1b   : > { %s1272_s10 = sshll.u32 %s1454_s8, 4  ;;  %s1273_s10 = int_to_ptr.vmem [resolvable:$false] %s1272_s10 }
  0x1c   : > { %p1270_p9 = pnand %p1268_p8, %p1256_p7  ;;  %s1274_s9 = scalar_lea.vmem %s1273_s10, 512 }
  0x1d   : > { %p1275_p11 = scmp.lt.s32.totalorder %s296_s20, %s1273_s10  ;;  %p1276_p12 = scmp.lt.s32.totalorder %s1274_s9, %s1267_s23 }
  0x1e   : > { %p1271_p10 = pneg %p1270_p9 }
  0x1f   : > { %p1277_p13 = por %p1276_p12, %p1275_p11 }
  0x21   : > { %p1278_p0 = pnand %p1277_p13, %p1271_p10 }
  0x23   : > { %1281 = shalt.err (!%p1278_p0)
}
  0x24   : > { %s1791_s16 = smov 64   ;;  %s1793_s11 = smov 4  }
  0x25   : > { %1176 = dma.hbm_to_vmem [thread:$0]  (!%p1571_p6), %s294_s18, 256, %s296_s20, %s1575_s22, %s1791_s16, %s1791_s16, %s1793_s11  }
  0x26   : > { %s1589_s17 = sadd.s32 4294967295, %s1452_s29   ;;  %s1058_s19 = sadd.s32 4294967294, %s1452_s29  }
  0x27   : > { %p85_p2 = scmp.ne.s32.totalorder %s1436_s25, %s1432_s24  ;;  %p1799_p3 = scmp.eq.s32.totalorder %s1589_s17, 0 }
  0x28   : > { %p241_p4 = scmp.eq.s32.totalorder %s1589_s17, 2  ;;  %p247_p5 = scmp.eq.s32.totalorder %s1058_s19, 2 }
  0x29   : > { %p1059_p8 = scmp.ge.s32.totalorder %s1452_s29, 1  ;;  %p1599_p9 = por %p1799_p3, %p85_p2 }
  0x2a   : > { %p1606_p10 = por %p241_p4, %p79_p1  ;;  %p1610_p11 = por %p247_p5, %p85_p2 }
  0x2b   : > { %p254_p12 = scmp.lt.s32.totalorder %s1452_s29, 4  ;;  %s1457_s10 = smov [#allocation2]  }
  0x2c   : > { %s1811_s18 = scalar_select %p1606_p10, 1, 0 }
  0x2d   : > { %s1812_s20 = scalar_select %p1610_p11, 1, 0 }
  0x2e   : > { %p1615_p13 = pnand %p1059_p8, %p254_p12  ;;  %s270_s9 = sshll.u32 %s1457_s10, 4  ;;  %s1619_s9 = int_to_ptr.vmem [resolvable:$true] %s270_s9 }
  0x2f   : > { %1813 = sst [smem:[#allocation19_spill]] %s1812_s20  ;;  %s315_s11 = scalar_lea.vmem [#allocation7], %s1559_s14 }
  0x30   : > { %p1169_p0 = pneg %p1615_p13  ;;  %s1815_s3 = sld [smem:[#allocation21_spill]] }
  0x31   : > { %s322_s1 = sshll.u32 %s315_s11, 4  ;;  %s1458_s10 = smov [#allocation7]   ;;  %s323_s1 = int_to_ptr.vmem [resolvable:$true] %s322_s1 }
  0x32   : > { %p1630_p1 = pnand %p1169_p0, %p1799_p3  ;;  %s1295_s28 = scalar_lea.vmem %s323_s1, 256 }
  0x33   : > { %p1296_p2 = scmp.ne.s32.totalorder %s323_s1, %s1295_s28  ;;  %s1300_s13 = sshll.u32 %s1458_s10, 4  ;;  %s1301_s13 = int_to_ptr.vmem [resolvable:$false] %s1300_s13 }
  0x34   : > { %s1302_s20 = scalar_lea.vmem %s1301_s13, 512  ;;  %p1303_p8 = scmp.lt.s32.totalorder %s323_s1, %s1301_s13 }
  0x35   : > { %p1298_p4 = pnand %p1296_p2, %p1256_p7  ;;  %p1304_p12 = scmp.lt.s32.totalorder %s1302_s20, %s1295_s28 }
  0x36   : > { %s321_s16 = scalar_lea.hbm %s1815_s3, %s1562_s15 }
  0x37   : > { %p1299_p5 = pneg %p1298_p4  ;;  %p1305_p11 = por %p1304_p12, %p1303_p8 }
  0x39   : > { %p1306_p10 = pnand %p1305_p11, %p1299_p5 }
  0x3b   : > { %1309 = shalt.err (!%p1306_p10)
}
  0x3c   : > { %s1817_s12 = smov 4   ;;  %s1818_s11 = smov 64  }
  0x3d   : > { %1179 = dma.hbm_to_vmem [thread:$0]  (!%p1571_p6), %s321_s16, 256, %s323_s1, %s1575_s22, %s1818_s11, %s1818_s11, %s1817_s12  }
  0x3e   : > { %p1312_p0 = pneg %p1630_p1  ;;  %s1321_s19 = scalar_lea.vmem %s1619_s9, 256 }
  0x3f   : > { %p1322_p2 = scmp.ne.s32.totalorder %s1619_s9, %s1321_s19  ;;  %p1329_p11 = scmp.lt.s32.totalorder %s1619_s9, %s1619_s9 }
  0x40   : > { %p1330_p10 = scmp.lt.s32.totalorder %s1321_s19, %s1321_s19 }
  0x41   : > { %p1324_p4 = pnand %p1322_p2, %p1312_p0 }
  0x42   : > { %p1331_p5 = por %p1330_p10, %p1329_p11 }
  0x43   : > { %p1325_p3 = pneg %p1324_p4 }
  0x45   : > { %p1332_p8 = pnand %p1331_p5, %p1325_p3 }
  0x47   : > { %1335 = shalt.err (!%p1332_p8)
}
  0x48   : > { %1172 = dma.hbm_to_vmem [thread:$0]  (!%p1630_p1), %s1782_s0, 256, %s1619_s9, [#allocation3], %s1818_s11, %s1818_s11, %s1817_s12  }
  0x49   : > { %s348_s16 = scalar_lea.hbm %s1787_s5, %s1562_s15  ;;  %s342_s20 = scalar_lea.vmem [#allocation8], %s1559_s14 }
  0x4a   : > { %s349_s10 = sshll.u32 %s342_s20, 4  ;;  %s1819_s30 = sand.u32 1, %s1440_s26   ;;  %s350_s10 = int_to_ptr.vmem [resolvable:$true] %s349_s10 }
  0x4b   : > { %s339_s19 = scalar_lea.sflag [#allocation9], %s1819_s30  ;;  %s1349_s3 = scalar_lea.vmem %s350_s10, 256 }
  0x4c   : > { %p1350_p3 = scmp.ne.s32.totalorder %s350_s10, %s1349_s3  ;;  %s1459_s28 = smov [#allocation8]  }
  0x4d   : > { %s1354_s1 = sshll.u32 %s1459_s28, 4  ;;  %s1355_s1 = int_to_ptr.vmem [resolvable:$false] %s1354_s1 }
  0x4e   : > { %p1352_p12 = pnand %p1350_p3, %p1256_p7  ;;  %s1356_s24 = scalar_lea.vmem %s1355_s1, 512 }
  0x4f   : > { %p1357_p1 = scmp.lt.s32.totalorder %s350_s10, %s1355_s1  ;;  %p1358_p2 = scmp.lt.s32.totalorder %s1356_s24, %s1349_s3 }
  0x50   : > { %p1353_p0 = pneg %p1352_p12 }
  0x51   : > { %p1359_p4 = por %p1358_p2, %p1357_p1 }
  0x53   : > { %p1360_p11 = pnand %p1359_p4, %p1353_p0 }
  0x55   : > { %1363 = shalt.err (!%p1360_p11)
}
  0x56   : > { %1182 = dma.hbm_to_vmem [thread:$0]  (!%p1571_p6), %s348_s16, 256, %s350_s10, %s339_s19, %s1818_s11, %s1818_s11, %s1817_s12  }
  0x57   : > { %367 = sbr.rel (%p1615_p13) target bundleno = 937 (0x3a9), region = 48  ;;  %p1820_p7 = scmp.eq.s32.totalorder (!%p1615_p13), %s1589_s17, 0 }
  0x5c   : > { %1415 = dma.done.wait (%p1820_p7), [#allocation3], 256   ;;  %p1821_p10 = pmov %p1820_p7 }
  0x5d   : > { %s373_s3 = sand.u32 1, %s1589_s17   ;;  %s1681_s24 = sand.u32 1, %s1436_s25  }
  0x5e   : > { %1417 = vsyncadd (%p1821_p10), [#allocation3], 4294967040  ;;  %s1684_s14 = sshll.u32 %s1681_s24, 4  ;;  %s374_s15 = scalar_lea.sflag [#allocation6], %s373_s3 }
  0x5f   : > { %s377_s21 = scalar_lea.vmem [#allocation5], %s1684_s14 }
  0x60   : > { %1419 = dma.done.wait (%p1599_p9), %s374_s15, 512  }
  0x61   : > { %1421 = vsyncadd (%p1599_p9), %s374_s15, 4294966784  ;;  %s386_s8 = scalar_lea.vmem [#allocation7], %s1684_s14  ;;  %s392_s9 = scalar_lea.sflag [#allocation9], %s1681_s24 }
  0x62   : > { %s395_s17 = scalar_lea.vmem [#allocation8], %s1684_s14 }
  0x63   : > { %1423 = dma.done.wait (%p1599_p9), %s392_s9, 256  }
  0x64   : > { %1425 = vsyncadd (%p1599_p9), %s392_s9, 4294967040  ;;  %v1246_v0 = vld [vmem:[%s377_s21 + $0x8] sm:$0xff]   ;;  %v1247_v1 = vld [vmem:[%s377_s21] sm:$0xff]   ;;  %vm504_vm0 = vcmask 261120   ;;  %p446_p6 = scmp.lt.s32.totalorder %s1444_s27, 2  ;;  %v1460_v38 = vmov 0.0  }
  0x65   : > { %1123 = vmatprep.subr.bf16.mxu0 %v1246_v0  ;;  %v1248_v2 = vld [vmem:[#allocation2] sm:$0xff]   ;;  %v1249_v3 = vld [vmem:[#allocation2 + $0x8] sm:$0xff]   ;;  %vm1461_vm1 = vmmov 0   ;;  %vm870_vm2 = vcmask 64512   ;;  %s444_s28 = scalar_lea.vmem [#allocation10], %s1684_s14  ;;  %s1106_s3 = sshll.u32 %s1444_s27, 8 }
  0x66   : > { %1124 = vmatpush3.bf16.msra.mxu0 %v1246_v0  ;;  %1127 = vmatprep.mubr.msk.bf16.mxu0 %vm504_vm0, %v1248_v2  ;;  %v1250_v4 = vld [vmem:[%s386_s8 + $0x8] sm:$0xff]   ;;  %v1251_v5 = vld [vmem:[%s386_s8] sm:$0xff]   ;;  %s1702_s23 = scalar_select %p446_p6, %s1444_s27, 2 }
  0x67   : > { %1125 = vmatprep.subr.bf16.mxu0 %v1247_v1  ;;  %1131 = vmatprep.subr.bf16.mxu1 %v1250_v4  ;;  %v1252_v21 = vld [vmem:[%s395_s17 + $0x8] sm:$0xff]   ;;  %v1253_v22 = vld [vmem:[%s395_s17] sm:$0xff]   ;;  %s889_s1 = sshll.u32 %s444_s28, 4  ;;  %s1735_s8 = scalar_lea.hbm %s1789_s7, %s1106_s3  ;;  %s1730_s1 = int_to_ptr.vmem [resolvable:$true] %s889_s1 }
  0x68   : > { %1132 = vmatpush3.bf16.msra.mxu1 %v1250_v4  ;;  %s448_s13 = scalar_lea.vmem %s1784_s2, %s1702_s23  ;;  %s451_s20 = scalar_lea.vmem %s1786_s4, %s1702_s23 }
  0x69   : > { %1133 = vmatprep.subr.bf16.mxu1 %v1251_v5  ;;  %v1077_v8 = vld [vmem:[%s448_s13] ss:$0 sm:$0xff]  ;;  %s454_s19 = scalar_lea.vmem %s1788_s6, %s1702_s23  ;;  %s874_s9 = scalar_lea.sflag [#allocation4], %s1681_s24 }
  0x6a   : > { %1126 = vmatpush3.bf16.msra.mxu0 %v1247_v1  ;;  %v1084_v25 = vld [vmem:[%s451_s20] ss:$0 sm:$0xff]  ;;  %s1364_s14 = scalar_lea.vmem %s1730_s1, 256  ;;  %p1822_p13 = scmp.ne.s32.totalorder %s1811_s18, 0 }
  0x6b   : > { %1139 = vmatprep.subr.bf16.mxu0 %v1252_v21  ;;  %v1089_v42 = vld [vmem:[%s454_s19] ss:$0 sm:$0xff]  ;;  %p1365_p9 = scmp.ne.s32.totalorder %s1730_s1, %s1364_s14  ;;  %s1462_s27 = smov [#allocation10]  }
  0x6c   : > { %1134 = vmatpush3.bf16.msra.mxu1 %v1251_v5  ;;  %s1368_s17 = sshll.u32 %s1462_s27, 4  ;;  %s1369_s17 = int_to_ptr.vmem [resolvable:$false] %s1368_s17 }
  0x6d   : > { %1128 = vmatmul.mubr.msk.bf16.vlgmr.msra.gmra.mxu0 %vm504_vm0, %v1249_v3  ;;  %1147 = vmatprep.subr.mxu1 %v1460_v38  ;;  %p1366_p5 = pnand %p1365_p9, %p1822_p13  ;;  %s1370_s23 = scalar_lea.vmem %s1369_s17, 512 }
  0x6e   : > { %1140 = vmatpush3.bf16.msra.mxu0 %v1252_v21  ;;  %p1371_p3 = scmp.lt.s32.totalorder %s1730_s1, %s1369_s17  ;;  %p1372_p12 = scmp.lt.s32.totalorder %s1370_s23, %s1364_s14 }
  0x6f   : > { %1141 = vmatprep.subr.bf16.mxu0 %v1253_v22  ;;  %p1367_p8 = pneg %p1366_p5 }
  0x70   : > { %p1373_p0 = por %p1372_p12, %p1371_p3 }
  0x72   : > { %1142 = vmatpush3.bf16.msra.mxu0 %v1253_v22  ;;  %p1374_p1 = pnand %p1373_p0, %p1367_p8 }
 0x12d   : > { %v1129_v6 = vpop.f32.mrf.mxu0 }
 0x12e   : > { %v554_v12 = vadd.f32 %v1129_v6, %v1077_v8 }
 0x12f   : > { %v545_v7 = vpop.f32.mrf.mxu0 }
 0x130   : > { %v546_v10 = vadd.f32 %v1077_v8, %v545_v7  ;;  %v562_v18 = vmax.f32 %v554_v12, 0.0 }
 0x131   : > { %v1130_v9 = vpop.f32.mrf.mxu0 }
 0x132   : > { %v557_v11 = vadd.f32 %v1130_v9, %v1077_v8  ;;  %v560_v16 = vmax.f32 %v546_v10, 0.0 }
 0x133   : > { %v548_v13 = vpop.f32.mrf.mxu0 }
 0x134   : > { %v549_v14 = vadd.f32 %v1077_v8, %v548_v13  ;;  %v563_v15 = vmax.f32 %v557_v11, 0.0 }
 0x136   : > { %v561_v17 = vmax.f32 %v549_v14, 0.0  ;;  %v565_v20 = vpack.c.bf16 %v563_v15, %v562_v18 }
 0x138   : > { %v564_v19 = vpack.c.bf16 %v561_v17, %v560_v16 }
 0x13a   : > { %1135 = vmatprep.mubr.msk.bf16.mxu1 %vm504_vm0, %v564_v19 }
 0x13b   : > { %1136 = vmatmul.mubr.msk.bf16.vlgmr.msra.gmra.mxu1 %vm504_vm0, %v565_v20 }
 0x13c   : > { %1149 = vmatprep.mubr.msk.f32.mxu1 %vm1461_vm1, %v1460_v38 }
 0x1fb   : > { %v1137_v23 = vpop.f32.mrf.mxu1 }
 0x1fc   : > { %v633_v29 = vadd.f32 %v1137_v23, %v1084_v25 }
 0x1fd   : > { %v624_v24 = vpop.f32.mrf.mxu1 }
 0x1fe   : > { %v625_v27 = vadd.f32 %v1084_v25, %v624_v24  ;;  %v641_v35 = vmax.f32 %v633_v29, 0.0 }
 0x1ff   : > { %v1138_v26 = vpop.f32.mrf.mxu1 }
 0x200   : > { %v636_v28 = vadd.f32 %v1138_v26, %v1084_v25  ;;  %v639_v33 = vmax.f32 %v625_v27, 0.0 }
 0x201   : > { %v627_v30 = vpop.f32.mrf.mxu1 }
 0x202   : > { %v628_v31 = vadd.f32 %v1084_v25, %v627_v30  ;;  %v642_v32 = vmax.f32 %v636_v28, 0.0 }
 0x204   : > { %v640_v34 = vmax.f32 %v628_v31, 0.0  ;;  %v644_v37 = vpack.c.bf16 %v642_v32, %v641_v35 }
 0x206   : > { %v643_v36 = vpack.c.bf16 %v640_v34, %v639_v33 }
 0x208   : > { %1143 = vmatprep.mubr.msk.bf16.mxu0 %vm504_vm0, %v643_v36 }
 0x209   : > { %1144 = vmatmul.mubr.msk.bf16.vlgmr.msra.gmra.mxu0 %vm504_vm0, %v644_v37 }
 0x2c9   : > { %v1145_v39 = vpop.f32.mrf.mxu0 }
 0x2ca   : > { %v712_v47 = vadd.f32 %v1145_v39, %v1089_v42 }
 0x2cb   : > { %v703_v40 = vpop.f32.mrf.mxu0 }
 0x2cc   : > { %v704_v45 = vadd.f32 %v1089_v42, %v703_v40 }
 0x2cd   : > { %v1146_v41 = vpop.f32.mrf.mxu0 }
 0x2ce   : > { %v715_v46 = vadd.f32 %v1146_v41, %v1089_v42 }
 0x2cf   : > { %v706_v43 = vpop.f32.mrf.mxu0 }
 0x2d0   : > { %v707_v44 = vadd.f32 %v1089_v42, %v706_v43 }
 0x2d2   : > { %1148 = vmatpush3.xpose.msk.msra.mxu1 %vm504_vm0, %v707_v44 }
 0x2d3   : > { %1152 = vmatprep.subr.mxu1 %v1460_v38 }
 0x2d5   : > { %1150 = vmatmul.mubr.msk.f32.vlgmr.msra.gmra.mxu1 %vm504_vm0, %v704_v45 }
 0x2d6   : > { %1153 = vmatpush3.xpose.msk.msra.mxu1 %vm504_vm0, %v715_v46  ;;  %1154 = vmatprep.mubr.msk.f32.mxu1 %vm1461_vm1, %v1460_v38 }
 0x2d9   : > { %1155 = vmatmul.mubr.msk.f32.vlgmr.msra.gmra.mxu1 %vm504_vm0, %v712_v47 }
 0x395   : > { %v790_v48 = vpop.f32.mrf.mxu1 }
 0x396   : > { %871 = vst.msk [vmem:[%s444_s28] sm:$0xff] %vm870_vm2, %v790_v48 }
 0x397   : > { %v1151_v49 = vpop.f32.mrf.mxu1 }
 0x399   : > { %v866_v50 = vpop.f32.mrf.mxu1 }
 0x39a   : > { %872 = vst.msk [vmem:[%s444_s28 + $0x8] sm:$0xff] %vm870_vm2, %v866_v50 }
 0x39b   : > { %v1156_v51 = vpop.f32.mrf.mxu1 }
 0x39c   : > { %1377 = shalt.err (!%p1374_p1)
}
 0x39d   : > { %s1378_s12 = scalar_lea.hbm %s1735_s8, 256  ;;  %s1382_s22 = scalar_lea.hbm %s1789_s7, 768 }
 0x39e   : > { %p1379_p2 = scmp.ne.s32.totalorder %s1735_s8, %s1378_s12  ;;  %p1383_p7 = scmp.lt.s32.totalorder %s1735_s8, %s1789_s7 }
 0x39f   : > { %p1384_p10 = scmp.lt.s32.totalorder %s1382_s22, %s1378_s12 }
 0x3a0   : > { %p1380_p4 = pnand %p1379_p2, %p1822_p13 }
 0x3a1   : > { %p1385_p6 = por %p1384_p10, %p1383_p7 }
 0x3a2   : > { %p1381_p11 = pneg %p1380_p4 }
 0x3a4   : > { %p1386_p9 = pnand %p1385_p6, %p1381_p11 }
 0x3a6   : > { %1389 = shalt.err (!%p1386_p9)
}
 0x3a7   : > { %s1463_s10 = smov 128   ;;  %s1464_s30 = smov 8  }
 0x3a8   : > { %1167 = dma.vmem_to_hbm [thread:$0]  (%p1822_p13), %s1730_s1, 256, %s1735_s8, %s874_s9, %s1463_s10, %s1463_s10, %s1464_s30  }
 0x3a9 PF: > { %s1823_s19 = sld [smem:[#allocation15_spill]]  ;;  %p1190_p5 = scmp.ge.s32.totalorder %s1452_s29, 2 }
 0x3aa   : > { %s1824_s28 = sld [smem:[#allocation19_spill]] }
 0x3af   : > { %s904_s3 = sand.u32 1, %s1823_s19  }
 0x3b0   : > { %p1825_p8 = scmp.ne.s32.totalorder %s1824_s28, 0  ;;  %s905_s15 = scalar_lea.sflag [#allocation4], %s904_s3 }
 0x3b2   : > { %p1184_p3 = pnand %p1190_p5, %p1825_p8 }
 0x3b4   : > { %p1185_p12 = pneg %p1184_p3 }
 0x3b6   : > { %1427 = dma.done.wait (%p1185_p12), %s905_s15, 256  }
 0x3b7   : > { %1429 = vsyncadd (%p1185_p12), %s905_s15, 4294967040  ;;  %s27_s29 = sadd.s32 1, %s1452_s29   ;;  %s1826_s18 = sld [smem:[#allocation18_spill]] }
 0x3b8   : > { %p24_p0 = scmp.ge.s32.totalorder %s27_s29, 5   ;;  %s1827_s27 = sld [smem:[#allocation16_spill]] }
 0x3b9   : > { %s1828_s28 = sld [smem:[#allocation17_spill]]  ;;  %s1829_s24 = smov %s1436_s25 }
 0x3ba   : > { %s1830_s25 = smov %s1440_s26  ;;  %26 = sbr.rel (!%p24_p0) target bundleno = 12 (0xc), region = 132 }
 0x3bd   : > { %s1831_s26 = smov %s1826_s18 }
 0x3bf   :  { %910 = vsyncpa [#allocation3], 1 }
 0x3c0   :  { %912 = vsyncpa [#allocation3 + $0x1], 1 }
 0x3c1   :  { %913 = vsyncpa [#allocation6], 1 }
 0x3c2   :  { %915 = vsyncpa [#allocation6 + $0x1], 1 }
 0x3c3   :  { %916 = vsyncpa [#allocation9], 1 }
 0x3c4   :  { %918 = vsyncpa [#allocation9 + $0x1], 1 }
 0x3c5   :  { %919 = vsyncpa [#allocation4], 1 }
 0x3c6   :  { %921 = vsyncpa [#allocation4 + $0x1], 1 }

</bundles_post_ra>
